<compile_context>
chip_gen: v7x
topology: tpu7x:2x2x1
jax: 0.10.0
libtpu: 0.0.40
codegen_flags: <defaults>
</compile_context>

<pallas_src>
import jax
import jax.numpy as jnp
from jax.experimental import pallas as pl
from jax.experimental.pallas import tpu as pltpu


# ----------------------------------------------------------------------------
# Kernel 1: pairwise negative squared distance  d[i, j] = -||p_i - p_j||^2
# Tiled over (batch, query rows, key columns); all grid axes parallel.
# ----------------------------------------------------------------------------
def _pairwise_dist_kernel(xa_ref, xb_ref, sqr_ref, sqc_ref, d_ref):
    # xa: (C, tm), xb: (C, tn) — contract the leading C axis (transposed-LHS
    # matmul); both operand tiles are lane-dense (points on the 128-lane axis).
    g = jax.lax.dot_general(
        xa_ref[...], xb_ref[...],
        dimension_numbers=(((0,), (0,)), ((), ())),
        preferred_element_type=jnp.float32)                        # (tm, tn)
    d_ref[...] = 2.0 * g - sqr_ref[...] - sqc_ref[...]             # -|pi|^2 -|pj|^2


def pairwise_neg_sqdist(x, *, row_tile=512, col_tile=1024):
    """x: (B, C, N) float32 -> (B, N, N) float32 of -||p_i - p_j||^2."""
    B, C, N = x.shape
    x = x.astype(jnp.float32)
    sq_col = jnp.sum(x * x, axis=1, keepdims=True)                 # (B, 1, N)
    sq_row = jnp.transpose(sq_col, (0, 2, 1))                      # (B, N, 1)

    tm = N if N <= row_tile else row_tile                          # mult of 8
    tn = N if N <= col_tile else col_tile                          # mult of 128
    grid = (B, pl.cdiv(N, tm), pl.cdiv(N, tn))

    cost = pl.CostEstimate(
        flops=2 * B * N * N * C + 3 * B * N * N,
        transcendentals=0,
        bytes_accessed=4 * (B * N * N + 2 * B * C * N + 2 * B * N))

    return pl.pallas_call(
        _pairwise_dist_kernel,
        out_shape=jax.ShapeDtypeStruct((B, N, N), jnp.float32),
        grid=grid,
        in_specs=[
            pl.BlockSpec((None, C, tm), lambda b, i, j: (b, 0, i)),
            pl.BlockSpec((None, C, tn), lambda b, i, j: (b, 0, j)),
            pl.BlockSpec((None, tm, 1), lambda b, i, j: (b, i, 0)),
            pl.BlockSpec((None, 1, tn), lambda b, i, j: (b, 0, j)),
        ],
        out_specs=pl.BlockSpec((None, tm, tn), lambda b, i, j: (b, i, j)),
        compiler_params=pltpu.CompilerParams(
            dimension_semantics=("parallel", "parallel", "parallel"),
            vmem_limit_bytes=32 * 1024 * 1024),
        cost_estimate=cost,
    )(x, x, sq_row, sq_col)


# ----------------------------------------------------------------------------
# Kernel 2: per-neighbor projection W1 @ x_nbr fused with the max over k,
# center term (W2 - W1) @ x_ctr, folded-BN bias and LeakyReLU(0.2).
# Output is lane-dense (B, O, N); grid = (B, N tiles), both parallel.
# ----------------------------------------------------------------------------
def _make_edge_max_kernel(k):
    def kernel(xg_ref, x_ref, wn_ref, wc_ref, bias_ref, o_ref):
        wn = wn_ref[...]                                           # (O, C)
        # xg_ref: (k, C, tn) gathered neighbor coords. Two interleaved running
        # maxes (even/odd j) halve the dependent vmax chain.
        m0 = jnp.dot(wn, xg_ref[0], preferred_element_type=jnp.float32)
        m1 = (jnp.dot(wn, xg_ref[1], preferred_element_type=jnp.float32)
              if k > 1 else m0)
        for j in range(2, k):                                      # k static, small
            p = jnp.dot(wn, xg_ref[j], preferred_element_type=jnp.float32)
            if j % 2 == 0:
                m0 = jnp.maximum(m0, p)
            else:
                m1 = jnp.maximum(m1, p)
        m = jnp.maximum(m0, m1)                                    # (O, tn)
        # center term (W2 - W1) @ x_center
        yc = jnp.dot(wc_ref[...], x_ref[...],
                     preferred_element_type=jnp.float32)           # (O, tn)
        y = m + yc + bias_ref[...]
        o_ref[...] = jnp.maximum(y, 0.2 * y)                       # LeakyReLU(0.2)
    return kernel


def _edge_max(xg, x, w_n, w_c, bias, k, *, col_tile=1024):
    """xg: (B,k,C,N), x: (B,C,N), w_n/w_c: (O,C), bias: (O,1) -> (B,O,N)."""
    B, _, C, N = xg.shape
    O = w_n.shape[0]

    if N <= col_tile:
        tn = N
    else:
        tn = col_tile
        # v7x is the tightest generation (64 MiB physical / 32 MiB scoped per
        # TC): keep the double-buffered gathered block under ~12 MiB so the
        # whole working set stays well inside the 32 MiB scoped limit.
        while tn > 128 and 2 * k * C * tn * 4 > (12 << 20):
            tn //= 2
    # with a single batch, ensure >= 2 programs on a parallel axis so both of
    # v7x's TensorCores get work
    if B == 1 and N >= 256 and pl.cdiv(N, tn) < 2:
        tn = max(128, ((N // 2 + 127) // 128) * 128)

    grid = (B, pl.cdiv(N, tn))

    cost = pl.CostEstimate(
        flops=2 * B * (k + 1) * O * C * N + 4 * B * O * N,
        transcendentals=0,
        bytes_accessed=4 * (B * k * C * N + B * C * N + B * O * N
                            + 2 * O * C + O))

    return pl.pallas_call(
        _make_edge_max_kernel(k),
        out_shape=jax.ShapeDtypeStruct((B, O, N), jnp.float32),
        grid=grid,
        in_specs=[
            pl.BlockSpec((None, k, C, tn), lambda b, n: (b, 0, 0, n)),
            pl.BlockSpec((None, C, tn), lambda b, n: (b, 0, n)),
            pl.BlockSpec((O, C), lambda b, n: (0, 0)),
            pl.BlockSpec((O, C), lambda b, n: (0, 0)),
            pl.BlockSpec((O, 1), lambda b, n: (0, 0)),
        ],
        out_specs=pl.BlockSpec((None, O, tn), lambda b, n: (b, 0, n)),
        compiler_params=pltpu.CompilerParams(
            dimension_semantics=("parallel", "parallel"),
            vmem_limit_bytes=32 * 1024 * 1024),
        cost_estimate=cost,
    )(xg, x, w_n, w_c, bias)


# ----------------------------------------------------------------------------
# Full EdgeConvolution forward.
# ----------------------------------------------------------------------------
def edge_conv_forward(x, conv_w, bn_gamma, bn_beta, bn_mean, bn_var, k,
                      eps=1e-5):
    """x: (B, C, N) float32, conv_w: (O, 2C, 1, 1) -> (B, O, N)."""
    B, C, N = x.shape
    O = conv_w.shape[0]
    x = x.astype(jnp.float32)

    # ---- kNN graph: distance matmul in Pallas; exact top-k in XLA ----
    d = pairwise_neg_sqdist(x)                                     # (B, N, N)
    idx = jax.lax.top_k(d, k)[1]                                   # (B, N, k)

    # ---- fold 1x1 conv + inference BN, split into neighbor/center weights ----
    # conv([x_nbr - x_ctr, x_ctr]) == W1 @ x_nbr + (W2 - W1) @ x_ctr
    w = conv_w.reshape(O, 2 * C).astype(jnp.float32)
    inv_std = 1.0 / jnp.sqrt(bn_var.astype(jnp.float32) + eps)
    scale = bn_gamma.astype(jnp.float32) * inv_std                 # (O,)
    w_eff = w * scale[:, None]                                     # BN scale folded
    w_n = w_eff[:, :C]                                             # acts on x_neighbor
    w_c = w_eff[:, C:] - w_n                                       # acts on x_center
    bias = (bn_beta.astype(jnp.float32)
            - bn_mean.astype(jnp.float32) * scale).reshape(O, 1)

    # ---- gather raw (C-wide) neighbor coordinates; projection happens in-kernel
    idx_t = jnp.transpose(idx, (0, 2, 1))                          # (B, k, N)
    xg = jnp.take_along_axis(x[:, None, :, :], idx_t[:, :, None, :],
                             axis=3)                               # (B, k, C, N)

    # ---- Pallas: project-k + max + center term + bias + LeakyReLU -> (B, O, N)
    return _edge_max(xg, x, w_n, w_c, bias, k)


# ----------------------------------------------------------------------------
if __name__ == "__main__":
    B, C, N, K, OUT = 2, 4, 16, 8, 32
    key = jax.random.PRNGKey(0)
    kx, kw, kg, kb, km, kv = jax.random.split(key, 6)

    x = jax.random.normal(kx, (B, C, N), dtype=jnp.float32)
    conv_w = 0.1 * jax.random.normal(kw, (OUT, 2 * C, 1, 1), dtype=jnp.float32)
    bn_gamma = 1.0 + 0.1 * jax.random.normal(kg, (OUT,), dtype=jnp.float32)
    bn_beta = 0.1 * jax.random.normal(kb, (OUT,), dtype=jnp.float32)
    bn_mean = 0.05 * jax.random.normal(km, (OUT,), dtype=jnp.float32)
    bn_var = jnp.abs(1.0 + 0.1 * jax.random.normal(kv, (OUT,), dtype=jnp.float32))

    # --- run the Pallas implementation ---
    out_pal = edge_conv_forward(x, conv_w, bn_gamma, bn_beta, bn_mean, bn_var, K)
    out_pal = jax.block_until_ready(out_pal)
    assert out_pal.shape == (B, OUT, N)

    # --- pure-JAX reference for the original (unfused) module semantics ---
    xt = jnp.transpose(x, (0, 2, 1))
    gram = jnp.einsum("bcn,bcm->bnm", x, x)
    sq = jnp.sum(x * x, axis=1, keepdims=True)                     # (B, 1, N)
    d_ref = 2.0 * gram - sq - jnp.transpose(sq, (0, 2, 1))
    d_pal = pairwise_neg_sqdist(x)
    assert jnp.allclose(d_pal, d_ref, atol=1e-3, rtol=1e-3)

    # use the same kNN indices the Pallas path sees (avoids tie-order noise)
    idx = jax.lax.top_k(d_pal, K)[1]
    neigh = jax.vmap(lambda p, i: p[i])(xt, idx)                   # (B, N, K, C)
    center = jnp.broadcast_to(xt[:, :, None, :], neigh.shape)
    edge = jnp.concatenate([neigh - center, center], axis=-1)      # (B, N, K, 2C)
    w2 = conv_w.reshape(OUT, 2 * C)
    z = jnp.einsum("bnkc,oc->bnko", edge, w2)
    scale = bn_gamma / jnp.sqrt(bn_var + 1e-5)
    z = z * scale + (bn_beta - bn_mean * scale)
    z = jnp.where(z >= 0.0, z, 0.2 * z)
    out_ref = jnp.transpose(jnp.max(z, axis=2), (0, 2, 1))         # (B, OUT, N)
    assert jnp.allclose(out_pal, out_ref, atol=1e-3, rtol=1e-3)

    print("KERNEL_OK")
</pallas_src>

<mosaic_0001>
module attributes {stable_mosaic.version = 11 : i64} {
  func.func @_pairwise_dist_kernel(%arg0: i32, %arg1: i32, %arg2: i32, %arg3: memref<1x4x16xf32, #tpu.memory_space<vmem>>, %arg4: memref<1x4x16xf32, #tpu.memory_space<vmem>>, %arg5: memref<1x16x1xf32, #tpu.memory_space<vmem>>, %arg6: memref<1x1x16xf32, #tpu.memory_space<vmem>>, %arg7: memref<1x16x16xf32, #tpu.memory_space<vmem>>) attributes {dimension_semantics = [#tpu.dimension_semantics<parallel>, #tpu.dimension_semantics<parallel>, #tpu.dimension_semantics<parallel>], iteration_bounds = array<i64: 2, 1, 1>, scalar_prefetch = 0 : i64, scratch_operands = 0 : i64, tpu.core_type = #tpu.core_type<tc>, window_params = [{transform_indices = @transform_0, window_bounds = array<i64: 1, 4, 16>}, {transform_indices = @transform_1, window_bounds = array<i64: 1, 4, 16>}, {transform_indices = @transform_2, window_bounds = array<i64: 1, 16, 1>}, {transform_indices = @transform_3, window_bounds = array<i64: 1, 1, 16>}, {transform_indices = @transform_4, window_bounds = array<i64: 1, 16, 16>}]} {
    %c0 = arith.constant 0 : index
    %c0_0 = arith.constant 0 : index
    %c0_1 = arith.constant 0 : index
    %0 = vector.load %arg3[%c0, %c0_0, %c0_1] : memref<1x4x16xf32, #tpu.memory_space<vmem>>, vector<1x4x16xf32>
    %1 = vector.shape_cast %0 : vector<1x4x16xf32> to vector<4x16xf32>
    %c0_2 = arith.constant 0 : index
    %c0_3 = arith.constant 0 : index
    %c0_4 = arith.constant 0 : index
    %2 = vector.load %arg4[%c0_2, %c0_3, %c0_4] : memref<1x4x16xf32, #tpu.memory_space<vmem>>, vector<1x4x16xf32>
    %3 = vector.shape_cast %2 : vector<1x4x16xf32> to vector<4x16xf32>
    %cst = arith.constant dense<0.000000e+00> : vector<16x16xf32>
    %4 = tpu.matmul %1, %3, %cst {dimension_numbers = #tpu.dot_dimension_numbers<[0], [0], [1], [1], [0, 1, 1, 1], [], []>} : vector<4x16xf32>, vector<4x16xf32>, vector<16x16xf32> -> vector<16x16xf32>
    %cst_5 = arith.constant 2.000000e+00 : f32
    %5 = vector.broadcast %cst_5 : f32 to vector<16x16xf32>
    %6 = arith.mulf %5, %4 : vector<16x16xf32>
    %c0_6 = arith.constant 0 : index
    %c0_7 = arith.constant 0 : index
    %c0_8 = arith.constant 0 : index
    %7 = vector.load %arg5[%c0_6, %c0_7, %c0_8] : memref<1x16x1xf32, #tpu.memory_space<vmem>>, vector<1x16x1xf32>
    %8 = vector.shape_cast %7 : vector<1x16x1xf32> to vector<16x1xf32>
    %9 = vector.broadcast %8 : vector<16x1xf32> to vector<16x16xf32>
    %10 = arith.subf %6, %9 : vector<16x16xf32>
    %c0_9 = arith.constant 0 : index
    %c0_10 = arith.constant 0 : index
    %c0_11 = arith.constant 0 : index
    %11 = vector.load %arg6[%c0_9, %c0_10, %c0_11] : memref<1x1x16xf32, #tpu.memory_space<vmem>>, vector<1x1x16xf32>
    %12 = vector.shape_cast %11 : vector<1x1x16xf32> to vector<1x16xf32>
    %13 = vector.broadcast %12 : vector<1x16xf32> to vector<16x16xf32>
    %14 = arith.subf %10, %13 : vector<16x16xf32>
    %c0_12 = arith.constant 0 : index
    %c0_13 = arith.constant 0 : index
    %c0_14 = arith.constant 0 : index
    %15 = vector.load %arg7[%c0_12, %c0_13, %c0_14] : memref<1x16x16xf32, #tpu.memory_space<vmem>>, vector<1x16x16xf32>
    %16 = vector.shape_cast %15 : vector<1x16x16xf32> to vector<16x16xf32>
    %17 = vector.shape_cast %14 : vector<16x16xf32> to vector<1x16x16xf32>
    tpu.vector_store %arg7[%c0_12, %c0_13, %c0_14], %17 {strides = array<i32>} : memref<1x16x16xf32, #tpu.memory_space<vmem>>, vector<1x16x16xf32>,
    return
  }
  func.func @transform_0(%arg0: i32, %arg1: i32, %arg2: i32) -> (i32, i32, i32) {
    %c0_i32 = arith.constant 0 : i32
    %c0_i32_0 = arith.constant 0 : i32
    return %arg0, %c0_i32, %arg1 : i32, i32, i32
  }
  func.func @transform_1(%arg0: i32, %arg1: i32, %arg2: i32) -> (i32, i32, i32) {
    %c0_i32 = arith.constant 0 : i32
    %c0_i32_0 = arith.constant 0 : i32
    return %arg0, %c0_i32, %arg2 : i32, i32, i32
  }
  func.func @transform_2(%arg0: i32, %arg1: i32, %arg2: i32) -> (i32, i32, i32) {
    %c0_i32 = arith.constant 0 : i32
    %c0_i32_0 = arith.constant 0 : i32
    return %arg0, %arg1, %c0_i32 : i32, i32, i32
  }
  func.func @transform_3(%arg0: i32, %arg1: i32, %arg2: i32) -> (i32, i32, i32) {
    %c0_i32 = arith.constant 0 : i32
    %c0_i32_0 = arith.constant 0 : i32
    return %arg0, %c0_i32, %arg2 : i32, i32, i32
  }
  func.func @transform_4(%arg0: i32, %arg1: i32, %arg2: i32) -> (i32, i32, i32) {
    %c0_i32 = arith.constant 0 : i32
    return %arg0, %arg1, %arg2 : i32, i32, i32
  }
}

</mosaic_0001>

<bundles_post_ra>
// kernel: tpu_custom_call.1
= control target key start
LH: loop header
LB: loop body
LE: loop exit
PB: predicated region body
PF: predicated region fallthrough
CT: control target
= control target key end

     0   :  { %9 = vsyncpa [#allocation3], 0  ;;  %s935_s0 = inlined_call_operand.vmem [shape: f32[2,4,16], index: 0, kind: input, shape index: {}]   ;;  %s936_s1 = inlined_call_operand.vmem [shape: f32[2,4,16], index: 1, kind: input, shape index: {}]   ;;  %s937_s2 = inlined_call_operand.vmem [shape: f32[2,16,1], index: 2, kind: input, shape index: {}]   ;;  %s938_s3 = inlined_call_operand.vmem [shape: f32[2,1,16], index: 3, kind: input, shape index: {}]   ;;  %s939_s4 = inlined_call_operand.hbm [shape: f32[2,16,16], index: 4, kind: output, shape index: {}]  }
   0x1   :  { %11 = vsyncpa [#allocation3 + $0x1], 0  ;;  %s806_s15 = smov 0   ;;  %s808_s16 = smov 0  }
   0x2   :  { %s810_s17 = smov 0   ;;  %s812_s18 = smov 0  }
   0x3   :  { %s814_s19 = smov 0   ;;  %s816_s20 = smov 0  }
   0x4 LB: > { %s607_s21 = sadd.s32 4294967295, %s775_s20   ;;  %s608_s22 = sadd.s32 4294967294, %s775_s20   ;;  %s775_s20 = sphi %s816_s20, %s17_s20   ;;  %s771_s19 = sphi %s814_s19, %s946_s19   ;;  %s767_s18 = sphi %s812_s18, %s945_s18   ;;  %s763_s17 = sphi %s810_s17, %s944_s17   ;;  %s759_s16 = sphi %s808_s16, %s943_s16   ;;  %s755_s15 = sphi %s806_s15, %s942_s15  }
   0x5   : > { %s36_s23 = sadd.s32 1, %s771_s19  ;;  %s159_s24 = sadd.s32 1, %s763_s17 }
   0x6   : > { %p38_p0 = scmp.ge.s32.totalorder %s36_s23, 2  ;;  %p169_p1 = scmp.ne.s32.totalorder %s763_s17, %s759_s16 }
   0x7   : > { %p170_p2 = scmp.eq.s32.totalorder %s607_s21, 1  ;;  %p175_p3 = scmp.ne.s32.totalorder %s759_s16, %s755_s15 }
   0x8   : > { %s948_s23 = smov (%p38_p0, %s36_s23), 0  ;;  %p176_p5 = scmp.eq.s32.totalorder %s608_s22, 1 }
   0x9   : > { %p846_p4 = por %p170_p2, %p169_p1  ;;  %s152_s26 = ssub.s32 %s771_s19, %s948_s23 }
   0xa   : > { %p611_p6 = scmp.ge.s32.totalorder %s775_s20, 1  ;;  %p157_p7 = scmp.eq.s32.totalorder %s152_s26, 0 }
   0xb   : > { %p853_p8 = por %p176_p5, %p175_p3  ;;  %p236_p9 = scmp.lt.s32.totalorder %s775_s20, 3 }
   0xc   : > { %s859_s28 = scalar_select %p157_p7, %s763_s17, %s159_s24  }
   0xd   : > { %p237_p10 = pnand %p611_p6, %p236_p9 }
   0xe   : > { %p286_p11 = scmp.lt.s32.totalorder (!%p237_p10), %s767_s18, 1  ;;  %vm358_vm0 = vcmask (!%p237_p10), 1043456   ;;  %v777_v2 = vmov (!%p237_p10), 0   ;;  %vm351_vm1 = vcmask (!%p237_p10), 31744   ;;  %s283_s21 = sand.u32 (!%p237_p10), 1, %s759_s16   ;;  %vm462_vm2 = vcmask (!%p237_p10), 130048  }
   0xf   : > { %240 = sbr.rel (%p237_p10) target bundleno = 394 (0x18a), region = 36  ;;  %696 = vset.pattern.permute.xlu1 (!%p237_p10), %v777_v2  ;;  %s612_s22 = sshll.u32 (!%p237_p10), %s283_s21, 4 }
  0x10   : > { %s285_s5 = scalar_lea.vmem (!%p237_p10), [#allocation2], %s612_s22 }
  0x11   : > { %s482_s6 = sshll.u32 (!%p237_p10), %s285_s5, 4  ;;  %s887_s6 = int_to_ptr.vmem [resolvable:$true] %s482_s6 }
  0x16   : > { %s863_s29 = scalar_select %p286_p11, %s767_s18, 1 }
  0x18   : > { %s613_s30 = sshll.u32 %s863_s29, 2  ;;  %s626_s11 = sshll.u32 %s863_s29, 4 }
  0x19   : > { %s292_s7 = scalar_lea.vmem %s935_s0, %s613_s30  ;;  %s299_s10 = scalar_lea.vmem %s936_s1, %s613_s30 }
  0x1a   : > { %v317_v0 = vld [vmem:[%s292_s7] sm:$0xf]  ;;  %s308_s14 = scalar_lea.vmem %s937_s2, %s626_s11  ;;  %s315_s30 = scalar_lea.vmem %s938_s3, %s863_s29 }
  0x1b   : > { %319 = vxpose.xlu0.b32.start.end [1/1] (short) (narrow) %v317_v0, 16  ;;  %v318_v1 = vld [vmem:[%s299_s10] sm:$0xf]  ;;  %v440_v3 = vld [vmem:[%s308_s14 + $0x8] sm:$0xff]  ;;  %s627_s7 = sshll.u32 %s767_s18, 8  ;;  %s889_s29 = scalar_lea.sflag [#allocation3], %s283_s21 }
  0x1c   : > { %631 = vmatprep.subr.msk.mxu0 %vm358_vm0, %v318_v1  ;;  %448 = vperm.xlu1 %696, %v440_v3   ;;  %v439_v4 = vld [vmem:[%s308_s14] sm:$0xff]  ;;  %s885_s10 = scalar_lea.hbm %s939_s4, %s627_s7  ;;  %s697_s18 = scalar_lea.vmem %s887_s6, 256 }
  0x1d   : > { %632 = vmatpush3.msk.msra.mxu0 %vm358_vm0, %v318_v1  ;;  %v620_v13 = vld [vmem:[%s315_s30] ss:$0 sm:$0xff]  ;;  %p698_p12 = scmp.ne.s32.totalorder %s887_s6, %s697_s18  ;;  %s778_s11 = smov [#allocation2]  }
  0x1e   : > { %s701_s12 = sshll.u32 %s778_s11, 4  ;;  %s702_s12 = int_to_ptr.vmem [resolvable:$false] %s701_s12 }
  0x1f   : > { %p699_p13 = pnand %p698_p12, %p846_p4  ;;  %s703_s13 = scalar_lea.vmem %s702_s12, 512 }
  0x20   : > { %p704_p1 = scmp.lt.s32.totalorder %s887_s6, %s702_s12  ;;  %p705_p2 = scmp.lt.s32.totalorder %s703_s13, %s697_s18 }
  0x21   : > { %p700_p0 = pneg %p699_p13 }
  0x22   : > { %p706_p3 = por %p705_p2, %p704_p1 }
  0x24   : > { %p707_p5 = pnand %p706_p3, %p700_p0 }
  0x44   : > { %695 = vset.pattern.permute.xlu0 %v777_v2 }
  0x48   : > { %443 = vperm.xlu0 %695, %v439_v4  }
  0x9b   : > { %v335_v5 = vpop.trf.xlu0  ;;  %v449_v8 = vpop.permute.xlu1 %448 }
  0x9c   : > { %633 = vmatprep.mubr.msk.f32.mxu0 %vm351_vm1, %v335_v5 }
  0x9f   : > { %v336_v6 = vpop.trf.xlu0 }
  0xa0   : > { %634 = vmatmul.mubr.msk.f32.vlgmr.msra.gmra.mrb[0].mxu0 %vm351_vm1, %v336_v6 }
  0xc7   : > { %v444_v11 = vpop.permute.xlu0 %443 }
 0x173   : > { %v635_v7 = vpop.f32.mrb[0].mxu0 }
 0x174   : > { %v438_v9 = vmul.f32 2.0, %v635_v7  ;;  %v428_v10 = vpop.f32.mrb[1].mxu0 }
 0x175   : > { %v437_v12 = vmul.f32 2.0, %v428_v10 }
 0x176   : > { %v452_v14 = vsub.f32 %v438_v9, %v449_v8 }
 0x177   : > { %v451_v15 = vsub.f32 %v437_v12, %v444_v11 }
 0x178   : > { %v461_v16 = vsub.f32 %v452_v14, %v620_v13 }
 0x179   : > { %v460_v17 = vsub.f32 %v451_v15, %v620_v13 }
 0x17a   : > { %464 = vst.msk [vmem:[%s285_s5 + $0x8] sm:$0xff] %vm462_vm2, %v461_v16 }
 0x17b   : > { %463 = vst.msk [vmem:[%s285_s5] sm:$0xff] %vm462_vm2, %v460_v17 }
 0x17c   : > { %710 = shalt.err (!%p707_p5)
}
 0x17d   : > { %s711_s14 = scalar_lea.hbm %s885_s10, 256  ;;  %s715_s24 = scalar_lea.hbm %s939_s4, 512 }
 0x17e   : > { %p712_p6 = scmp.ne.s32.totalorder %s885_s10, %s711_s14  ;;  %p716_p10 = scmp.lt.u32.totalorder %s885_s10, %s939_s4 }
 0x17f   : > { %p717_p11 = scmp.lt.u32.totalorder %s715_s24, %s711_s14  ;;  %p719_p13 = scmp.lt.u32.totalorder %s711_s14, %s885_s10 }
 0x180   : > { %p713_p7 = pnand %p712_p6, %p846_p4 }
 0x181   : > { %p718_p12 = por %p717_p11, %p716_p10 }
 0x182   : > { %p714_p9 = pneg %p713_p7 }
 0x183   : > { %p720_p0 = por %p719_p13, %p718_p12 }
 0x185   : > { %p721_p1 = pnand %p720_p0, %p714_p9 }
 0x187   : > { %724 = shalt.err (!%p721_p1)
}
 0x188   : > { %s779_s5 = smov 128   ;;  %s780_s7 = smov 8  }
 0x189   : > { %636 = dma.vmem_to_hbm [thread:$0]  (%p846_p4), %s887_s6, 256, %s885_s10, %s889_s29, %s779_s5, %s779_s5, %s780_s7  }
 0x18a PF: > { %p642_p2 = scmp.ge.s32.totalorder %s775_s20, 2  ;;  %s497_s8 = sand.u32 1, %s755_s15  }
 0x18b   : > { %s498_s9 = scalar_lea.sflag [#allocation3], %s497_s8 }
 0x18c   : > { %p639_p3 = pnand %p642_p2, %p853_p8 }
 0x18e   : > { %750 = dma.done.wait (!%p639_p3), %s498_s9, 256  }
 0x18f   : > { %752 = vsyncadd (!%p639_p3), %s498_s9, 4294967040  ;;  %s17_s20 = sadd.s32 1, %s775_s20   ;;  %s942_s15 = smov %s759_s16 }
 0x190   : > { %p14_p5 = scmp.ge.s32.totalorder %s17_s20, 4   ;;  %s943_s16 = smov %s763_s17 }
 0x191   : > { %s944_s17 = smov %s859_s28  ;;  %s945_s18 = smov %s771_s19 }
 0x192   : > { %s946_s19 = smov %s948_s23  ;;  %16 = sbr.rel (!%p14_p5) target bundleno = 4 (0x4), region = 80 }
 0x199   :  { %503 = vsyncpa [#allocation3], 1 }
 0x19a   :  { %505 = vsyncpa [#allocation3 + $0x1], 1 }

</bundles_post_ra>
